<compile_context>
chip_gen: v6e
topology: v6e:2x2x1
jax: 0.10.0
libtpu: 0.0.40
codegen_flags: <defaults>
</compile_context>

<pallas_src>
import jax
import jax.numpy as jnp
from jax.experimental import pallas as pl
from jax.experimental.pallas import tpu as pltpu

_LANE = 128
_SUBLANE = 8
_NEG_BIG = -1e30  # finite "minus infinity" for padded logits (no inf-inf NaN risk)


def _round_up(n, m):
    return (n + m - 1) // m * m


def _vmem_capacity_bytes():
    try:
        return int(pltpu.get_tpu_info().vmem_capacity_bytes)
    except Exception:
        return 64 * 1024 * 1024  # conservative fallback: v7x per-TensorCore VMEM


def _attention_kernel(x_ref, w1_ref, b1_ref, w2_ref, b2_ref, o_ref):
    """One batch tile of: softmax(relu(x@W1^T + b1) @ W2^T + b2, axis=-1).

    The feature axis is padded to a lane-dense multiple of 128; padded columns
    of b2 hold -1e30 so the corresponding logits underflow to exactly 0 in the
    softmax (no explicit mask needed).
    """
    x = x_ref[...]
    if x.dtype != jnp.bfloat16:           # aligned fast path delivers un-cast x
        x = x.astype(jnp.bfloat16)
    h = jnp.dot(x, w1_ref[...], preferred_element_type=jnp.float32)
    h = jnp.maximum(h + b1_ref[...], 0.0)                         # f32
    y = jnp.dot(h.astype(jnp.bfloat16), w2_ref[...],
                preferred_element_type=jnp.float32)
    y = y + b2_ref[...]                   # padded columns arrive at -1e30

    m = jnp.max(y, axis=-1, keepdims=True)
    e = jnp.exp(y - m)
    s = jnp.sum(e, axis=-1, keepdims=True)
    # Exact divide: softmax rows must sum to 1 (approx reciprocal was not
    # accurate enough); cost is negligible next to the two matmuls.
    o_ref[...] = (e / s).astype(o_ref.dtype)


def _choose_block_b(Bp_min, Dp, in_itemsize, out_itemsize):
    """Pick the batch tile from the VMEM budget, preferring >= 4 grid steps
    (>= 2 per v7x TensorCore so each core keeps DMA/compute overlap)."""
    budget = int(_vmem_capacity_bytes() * 0.75)    # headroom for Mosaic scratch
    resident = 2 * Dp * Dp * 2 + 2 * Dp * 4        # bf16 W1/W2 + f32 b1/b2, single-buffered
    per_row = (2 * Dp * in_itemsize                # x tile, double-buffered
               + 2 * Dp * out_itemsize             # out tile, double-buffered
               + 4 * Dp * 4)                       # f32 temporaries (h, y, e, ...)
    max_rows = max(_SUBLANE, (budget - resident) // per_row)

    candidates = (2048, 1024, 512, 256, 128, 64, 32, 16, 8)
    for cand in candidates:                        # biggest tile that still leaves >= 4 steps
        if cand <= max_rows and pl.cdiv(Bp_min, cand) >= 4:
            return cand
    for cand in candidates:                        # small batch: one or two big tiles
        if cand <= max_rows and cand <= Bp_min:
            return cand
    return _SUBLANE


def make_attention_params(w1, b1, w2, b2):
    """One-time prep (hoisted out of the per-call path): transpose PyTorch
    (out,in) weights to x@W form, zero-pad to a lane-dense (Dp, Dp), cast
    weights to bf16, and bake the padded-column softmax mask into b2."""
    D = w1.shape[0]
    Dp = _round_up(max(D, _LANE), _LANE)
    w1_t = jnp.zeros((Dp, Dp), jnp.float32).at[:D, :D].set(w1.T).astype(jnp.bfloat16)
    w2_t = jnp.zeros((Dp, Dp), jnp.float32).at[:D, :D].set(w2.T).astype(jnp.bfloat16)
    b1_p = jnp.zeros((1, Dp), jnp.float32).at[0, :D].set(b1)
    b2_p = jnp.full((1, Dp), _NEG_BIG, jnp.float32).at[0, :D].set(b2)
    return {"w1_t": w1_t, "b1_p": b1_p, "w2_t": w2_t, "b2_p": b2_p, "embed_dim": D}


def _const_spec(shape):
    # Constant-index resident block: a second pipeline buffer is pure VMEM
    # waste, so request single buffering. Graceful fallback for BlockSpec
    # signatures without pipeline_mode.
    try:
        return pl.BlockSpec(shape, lambda i: (0, 0), pipeline_mode=pl.Buffered(1))
    except (TypeError, AttributeError):
        return pl.BlockSpec(shape, lambda i: (0, 0))


def attention_mechanism_apply(params, x, *, block_b=None, out_dtype=None):
    """x: (B, D) float. Returns softmax(relu(x@W1^T+b1)@W2^T+b2, axis=1)."""
    B, D = x.shape
    assert D == params["embed_dim"]
    Dp = params["w1_t"].shape[0]
    # Pass out_dtype=jnp.bfloat16 to halve store-side HBM traffic if acceptable.
    out_dtype = jnp.dtype(out_dtype or x.dtype)

    Bp_min = _round_up(max(B, _SUBLANE), _SUBLANE)
    if block_b is None:
        block_b = _choose_block_b(Bp_min, Dp, in_itemsize=2,
                                  out_itemsize=out_dtype.itemsize)
    block_b = max(_SUBLANE, _round_up(block_b, _SUBLANE))
    Bp = _round_up(Bp_min, block_b)               # pad B up to the tile, never shrink the tile
    grid = (Bp // block_b,)

    needs_pad = (Bp != B) or (Dp != D)
    if needs_pad:
        # Single pad pass; fold the bf16 cast into it (halves x-path traffic).
        x_p = jnp.zeros((Bp, Dp), jnp.bfloat16).at[:B, :D].set(x.astype(jnp.bfloat16))
    else:
        # Aligned fast path: no extra HBM pass over x; the kernel casts.
        x_p = x

    in_itemsize = x_p.dtype.itemsize
    est = (2 * Dp * Dp * 2 + 2 * Dp * 4                           # resident weights + biases
           + 2 * block_b * Dp * (in_itemsize + out_dtype.itemsize)  # x/out, double-buffered
           + 4 * block_b * Dp * 4)                                # f32 temporaries
    vmem_limit = int(min(int(_vmem_capacity_bytes() * 0.85),
                         max(32 * 2 ** 20, 2 * est)))

    out = pl.pallas_call(
        _attention_kernel,
        out_shape=jax.ShapeDtypeStruct((Bp, Dp), out_dtype),
        grid_spec=pltpu.PrefetchScalarGridSpec(
            num_scalar_prefetch=0,
            grid=grid,
            in_specs=[
                pl.BlockSpec((block_b, Dp), lambda i: (i, 0)),  # x tile
                _const_spec((Dp, Dp)),                          # W1^T (resident)
                _const_spec((1, Dp)),                           # b1
                _const_spec((Dp, Dp)),                          # W2^T (resident)
                _const_spec((1, Dp)),                           # b2 (mask baked in)
            ],
            out_specs=pl.BlockSpec((block_b, Dp), lambda i: (i, 0)),
        ),
        compiler_params=pltpu.CompilerParams(
            dimension_semantics=("parallel",),
            vmem_limit_bytes=vmem_limit,
        ),
    )(x_p, params["w1_t"], params["b1_p"], params["w2_t"], params["b2_p"])

    # TODO(synk): for very large D (>= ~2048) add a grid axis over the feature
    # dim (tile W1^T / W2^T with an f32 VMEM accumulator + pl.when finalize)
    # instead of keeping full (Dp, Dp) weights resident.
    if needs_pad:
        out = out[:B, :D]
    return out


def attention_mechanism(x, w1, b1, w2, b2, **kwargs):
    """Convenience wrapper matching the PyTorch module's forward()."""
    return attention_mechanism_apply(make_attention_params(w1, b1, w2, b2), x, **kwargs)


def _reference(x, w1, b1, w2, b2):
    h = jnp.maximum(x @ w1.T + b1, 0.0)
    y = h @ w2.T + b2
    return jax.nn.softmax(y, axis=1)


if __name__ == "__main__":
    embed_dim = 32
    batch = 16

    key = jax.random.PRNGKey(0)
    kx, kw1, kb1, kw2, kb2 = jax.random.split(key, 5)

    # Deterministic synthetic parameters (shapes per nn.Linear(embed_dim, embed_dim))
    scale = 1.0 / jnp.sqrt(embed_dim)
    x = jax.random.normal(kx, (batch, embed_dim), dtype=jnp.float32)
    w1 = jax.random.uniform(kw1, (embed_dim, embed_dim), jnp.float32, -scale, scale)
    b1 = jax.random.uniform(kb1, (embed_dim,), jnp.float32, -scale, scale)
    w2 = jax.random.uniform(kw2, (embed_dim, embed_dim), jnp.float32, -scale, scale)
    b2 = jax.random.uniform(kb2, (embed_dim,), jnp.float32, -scale, scale)

    # Weight prep is hoisted: build once, reuse across calls.
    params = make_attention_params(w1, b1, w2, b2)
    out = attention_mechanism_apply(params, x)
    out = jax.block_until_ready(out)

    ref = _reference(x, w1, b1, w2, b2)
    assert out.shape == (batch, embed_dim)
    # bf16 MXU operands: slightly looser tolerance vs the f32 reference.
    assert jnp.allclose(out, ref, atol=5e-3, rtol=5e-3), "mismatch vs reference"
    assert jnp.allclose(out.sum(axis=1), 1.0, atol=1e-3), "softmax rows must sum to 1"

    print("KERNEL_OK")
</pallas_src>

<mosaic_0001>
module attributes {stable_mosaic.version = 11 : i64} {
  func.func @_attention_kernel(%arg0: i32, %arg1: memref<16x128xbf16, #tpu.memory_space<vmem>>, %arg2: memref<128x128xbf16, #tpu.memory_space<vmem>>, %arg3: memref<1x128xf32, #tpu.memory_space<vmem>>, %arg4: memref<128x128xbf16, #tpu.memory_space<vmem>>, %arg5: memref<1x128xf32, #tpu.memory_space<vmem>>, %arg6: memref<16x128xf32, #tpu.memory_space<vmem>>) attributes {dimension_semantics = [#tpu.dimension_semantics<parallel>], iteration_bounds = array<i64: 1>, scalar_prefetch = 0 : i64, scratch_operands = 0 : i64, tpu.core_type = #tpu.core_type<tc>, window_params = [{transform_indices = @transform_0, window_bounds = array<i64: 16, 128>}, {pipeline_mode = #tpu.pipeline_mode<synchronous>, transform_indices = @transform_1, window_bounds = array<i64: 128, 128>}, {pipeline_mode = #tpu.pipeline_mode<synchronous>, transform_indices = @transform_2, window_bounds = array<i64: 1, 128>}, {pipeline_mode = #tpu.pipeline_mode<synchronous>, transform_indices = @transform_3, window_bounds = array<i64: 128, 128>}, {pipeline_mode = #tpu.pipeline_mode<synchronous>, transform_indices = @transform_4, window_bounds = array<i64: 1, 128>}, {transform_indices = @transform_5, window_bounds = array<i64: 16, 128>}]} {
    %c0 = arith.constant 0 : index
    %c0_0 = arith.constant 0 : index
    %0 = vector.load %arg1[%c0, %c0_0] : memref<16x128xbf16, #tpu.memory_space<vmem>>, vector<16x128xbf16>
    %c0_1 = arith.constant 0 : index
    %c0_2 = arith.constant 0 : index
    %1 = vector.load %arg2[%c0_1, %c0_2] : memref<128x128xbf16, #tpu.memory_space<vmem>>, vector<128x128xbf16>
    %cst = arith.constant dense<0.000000e+00> : vector<16x128xf32>
    %2 = tpu.matmul %0, %1, %cst {dimension_numbers = #tpu.dot_dimension_numbers<[1], [0], [0], [1], [0, 0, 1, 1], [], []>} : vector<16x128xbf16>, vector<128x128xbf16>, vector<16x128xf32> -> vector<16x128xf32>
    %c0_3 = arith.constant 0 : index
    %c0_4 = arith.constant 0 : index
    %3 = vector.load %arg3[%c0_3, %c0_4] : memref<1x128xf32, #tpu.memory_space<vmem>>, vector<1x128xf32>
    %4 = vector.broadcast %3 : vector<1x128xf32> to vector<16x128xf32>
    %5 = arith.addf %2, %4 : vector<16x128xf32>
    %cst_5 = arith.constant 0.000000e+00 : f32
    %6 = vector.broadcast %cst_5 : f32 to vector<16x128xf32>
    %7 = arith.maximumf %5, %6 : vector<16x128xf32>
    %8 = arith.truncf %7 : vector<16x128xf32> to vector<16x128xbf16>
    %c0_6 = arith.constant 0 : index
    %c0_7 = arith.constant 0 : index
    %9 = vector.load %arg4[%c0_6, %c0_7] : memref<128x128xbf16, #tpu.memory_space<vmem>>, vector<128x128xbf16>
    %cst_8 = arith.constant dense<0.000000e+00> : vector<16x128xf32>
    %10 = tpu.matmul %8, %9, %cst_8 {dimension_numbers = #tpu.dot_dimension_numbers<[1], [0], [0], [1], [0, 0, 1, 1], [], []>} : vector<16x128xbf16>, vector<128x128xbf16>, vector<16x128xf32> -> vector<16x128xf32>
    %c0_9 = arith.constant 0 : index
    %c0_10 = arith.constant 0 : index
    %11 = vector.load %arg5[%c0_9, %c0_10] : memref<1x128xf32, #tpu.memory_space<vmem>>, vector<1x128xf32>
    %12 = vector.broadcast %11 : vector<1x128xf32> to vector<16x128xf32>
    %13 = arith.addf %10, %12 : vector<16x128xf32>
    %cst_11 = arith.constant dense<0xFF800000> : vector<16xf32>
    %14 = vector.multi_reduction <maximumf>, %13, %cst_11 [1] : vector<16x128xf32> to vector<16xf32>
    %15 = vector.shape_cast %14 : vector<16xf32> to vector<16x1xf32>
    %16 = vector.broadcast %15 : vector<16x1xf32> to vector<16x128xf32>
    %17 = arith.subf %13, %16 : vector<16x128xf32>
    %18 = math.exp %17 : vector<16x128xf32>
    %cst_12 = arith.constant dense<0.000000e+00> : vector<16xf32>
    %19 = vector.multi_reduction <add>, %18, %cst_12 [1] : vector<16x128xf32> to vector<16xf32>
    %20 = vector.shape_cast %19 : vector<16xf32> to vector<16x1xf32>
    %21 = vector.broadcast %20 : vector<16x1xf32> to vector<16x128xf32>
    %22 = arith.divf %18, %21 : vector<16x128xf32>
    %c0_13 = arith.constant 0 : index
    %c0_14 = arith.constant 0 : index
    %23 = vector.load %arg6[%c0_13, %c0_14] : memref<16x128xf32, #tpu.memory_space<vmem>>, vector<16x128xf32>
    tpu.vector_store %arg6[%c0_13, %c0_14], %22 {strides = array<i32>} : memref<16x128xf32, #tpu.memory_space<vmem>>, vector<16x128xf32>,
    return
  }
  func.func @transform_0(%arg0: i32) -> (i32, i32) {
    %c0_i32 = arith.constant 0 : i32
    %c0_i32_0 = arith.constant 0 : i32
    return %arg0, %c0_i32 : i32, i32
  }
  func.func @transform_1(%arg0: i32) -> (i32, i32) {
    %c0_i32 = arith.constant 0 : i32
    %c0_i32_0 = arith.constant 0 : i32
    %c0_i32_1 = arith.constant 0 : i32
    return %c0_i32, %c0_i32_0 : i32, i32
  }
  func.func @transform_2(%arg0: i32) -> (i32, i32) {
    %c0_i32 = arith.constant 0 : i32
    %c0_i32_0 = arith.constant 0 : i32
    %c0_i32_1 = arith.constant 0 : i32
    return %c0_i32, %c0_i32_0 : i32, i32
  }
  func.func @transform_3(%arg0: i32) -> (i32, i32) {
    %c0_i32 = arith.constant 0 : i32
    %c0_i32_0 = arith.constant 0 : i32
    %c0_i32_1 = arith.constant 0 : i32
    return %c0_i32, %c0_i32_0 : i32, i32
  }
  func.func @transform_4(%arg0: i32) -> (i32, i32) {
    %c0_i32 = arith.constant 0 : i32
    %c0_i32_0 = arith.constant 0 : i32
    %c0_i32_1 = arith.constant 0 : i32
    return %c0_i32, %c0_i32_0 : i32, i32
  }
  func.func @transform_5(%arg0: i32) -> (i32, i32) {
    %c0_i32 = arith.constant 0 : i32
    %c0_i32_0 = arith.constant 0 : i32
    return %arg0, %c0_i32 : i32, i32
  }
}

</mosaic_0001>

<bundles_post_ra>
// kernel: tpu_custom_call.1
= control target key start
LH: loop header
LB: loop body
LE: loop exit
PB: predicated region body
PF: predicated region fallthrough
CT: control target
= control target key end

     0   :  { %10 = vsyncpa [#allocation3], 0  ;;  %s592_s0 = inlined_call_operand.hbm [shape: bf16[16,128], index: 0, kind: input, shape index: {}]   ;;  %s593_s1 = inlined_call_operand.hbm [shape: bf16[128,128], index: 1, kind: input, shape index: {}]   ;;  %s594_s2 = inlined_call_operand.vmem [shape: f32[1,128], index: 2, kind: input, shape index: {}]   ;;  %s595_s3 = inlined_call_operand.hbm [shape: bf16[128,128], index: 3, kind: input, shape index: {}]   ;;  %s596_s4 = inlined_call_operand.vmem [shape: f32[1,128], index: 4, kind: input, shape index: {}]   ;;  %s597_s5 = inlined_call_operand.hbm [shape: f32[16,128], index: 5, kind: output, shape index: {}]  }
   0x1   :  { %11 = vsyncpa [#allocation6], 0 }
   0x2   :  { %12 = vsyncpa [#allocation4], 0  ;;  %s534_s18 = smov [#allocation5]   ;;  %s535_s20 = smov [#allocation2]  }
   0x3   :  { %s30_s19 = sshll.u32 %s534_s18, 4  ;;  %s18_s21 = sshll.u32 %s535_s20, 4  ;;  %s31_s19 = int_to_ptr.vmem [resolvable:$true] %s30_s19  ;;  %s19_s21 = int_to_ptr.vmem [resolvable:$true] %s18_s21 }
   0x4   :  { %s456_s22 = scalar_lea.vmem %s31_s19, 1024  ;;  %p461_p1 = scmp.lt.s32.totalorder %s31_s19, %s31_s19 }
   0x5   :  { %p457_p0 = scmp.ne.s32.totalorder %s31_s19, %s456_s22  ;;  %p462_p2 = scmp.lt.s32.totalorder %s456_s22, %s456_s22 }
   0x7   :  { %p463_p3 = por %p462_p2, %p461_p1 }
   0x9   :  { %p464_p4 = pnand %p463_p3, %p457_p0 }
   0xb   :  { %467 = shalt.err (!%p464_p4)
}
   0xc   :  { %s536_s23 = smov 64   ;;  %s537_s24 = smov 4  }
   0xd   :  { %36 = dma.hbm_to_vmem [thread:$0]  %s593_s1, 1024, %s31_s19, [#allocation6], %s536_s23, %s536_s23, %s537_s24  }
   0xe   :  { %s476_s27 = scalar_lea.vmem %s19_s21, 128  ;;  %p481_p6 = scmp.lt.s32.totalorder %s19_s21, %s19_s21 }
   0xf   :  { %p477_p5 = scmp.ne.s32.totalorder %s19_s21, %s476_s27  ;;  %p482_p7 = scmp.lt.s32.totalorder %s476_s27, %s476_s27 }
  0x11   :  { %p483_p8 = por %p482_p7, %p481_p6 }
  0x13   :  { %p484_p9 = pnand %p483_p8, %p477_p5 }
  0x15   :  { %487 = shalt.err (!%p484_p9)
}
  0x16   :  { %24 = dma.hbm_to_vmem [thread:$0]  %s592_s0, 128, %s19_s21, [#allocation3], %s536_s23, %s536_s23, %s537_s24  }
  0x17   :  { %s538_s30 = smov [#allocation7]  }
  0x18   :  { %s44_s6 = sshll.u32 %s538_s30, 4  ;;  %s45_s6 = int_to_ptr.vmem [resolvable:$true] %s44_s6 }
  0x19   :  { %s496_s7 = scalar_lea.vmem %s45_s6, 1024  ;;  %p501_p11 = scmp.lt.s32.totalorder %s45_s6, %s45_s6 }
  0x1a   :  { %p497_p10 = scmp.ne.s32.totalorder %s45_s6, %s496_s7  ;;  %p502_p12 = scmp.lt.s32.totalorder %s496_s7, %s496_s7 }
  0x1c   :  { %p503_p13 = por %p502_p12, %p501_p11 }
  0x1e   :  { %p504_p0 = pnand %p503_p13, %p497_p10 }
  0x20   :  { %507 = shalt.err (!%p504_p0)
}
  0x21   :  { %50 = dma.hbm_to_vmem [thread:$0]  %s595_s3, 1024, %s45_s6, [#allocation6], %s536_s23, %s536_s23, %s537_s24  }
  0x22   :  { %528 = dma.done.wait [#allocation3], 128  }
  0x23   :  { %529 = vsyncadd [#allocation3], 4294967168 }
  0x24   :  { %530 = dma.done.wait [#allocation6], 2048  }
  0x25   :  { %531 = vsyncadd [#allocation6], 4294965248  ;;  %v539_v0 = vmov 0.0   ;;  %vm540_vm0 = vmmov 0   ;;  %v423_v1 = vld [vmem:[#allocation5 + $0x38] sm:$0xff]   ;;  %v424_v2 = vld [vmem:[#allocation5 + $0x30] sm:$0xff]  }
  0x26   :  { %373 = vmatprep.subr.bf16.mxu0 %v539_v0  ;;  %389 = vmatprep.mubr.msk.bf16.mxu0 %vm540_vm0, %v539_v0  ;;  %v425_v3 = vld [vmem:[#allocation5 + $0x28] sm:$0xff]   ;;  %v432_v4 = vld [vmem:[#allocation7 + $0x38] sm:$0xff]   ;;  %v426_v5 = vld [vmem:[#allocation5 + $0x20] sm:$0xff]  }
  0x27   :  { %393 = vmatprep.subr.bf16.mxu1 %v539_v0  ;;  %409 = vmatprep.mubr.msk.bf16.mxu1 %vm540_vm0, %v539_v0  ;;  %v433_v6 = vld [vmem:[#allocation7 + $0x30] sm:$0xff]   ;;  %v427_v7 = vld [vmem:[#allocation5 + $0x18] sm:$0xff]   ;;  %v434_v8 = vld [vmem:[#allocation7 + $0x28] sm:$0xff]  }
  0x28   :  { %374 = vmatpush3.bf16.msra.mxu0 %v423_v1  ;;  %394 = vmatpush3.bf16.msra.mxu1 %v432_v4  ;;  %v428_v9 = vld [vmem:[#allocation5 + $0x10] sm:$0xff]   ;;  %v435_v10 = vld [vmem:[#allocation7 + $0x20] sm:$0xff]   ;;  %v429_v11 = vld [vmem:[#allocation5 + $0x8] sm:$0xff]  }
  0x29   :  { %375 = vmatprep.subr.bf16.mxu0 %v539_v0  ;;  %395 = vmatprep.subr.bf16.mxu1 %v539_v0  ;;  %v436_v12 = vld [vmem:[#allocation7 + $0x18] sm:$0xff]   ;;  %v430_v13 = vld [vmem:[#allocation5] sm:$0xff]   ;;  %v437_v15 = vld [vmem:[#allocation7 + $0x10] sm:$0xff]  }
  0x2a   :  { %v431_v14 = vld [vmem:[#allocation2] sm:$0xff]   ;;  %v438_v16 = vld [vmem:[#allocation7 + $0x8] sm:$0xff]   ;;  %v439_v17 = vld [vmem:[#allocation7] sm:$0xff]  }
  0x2b   :  { %v336_v18 = vld [vmem:[%s594_s2] ss:$0 sm:$0xff]  ;;  %s541_s2 = smov [#allocation8]  }
  0x2c   :  { %376 = vmatpush3.bf16.msra.mxu0 %v424_v2  ;;  %396 = vmatpush3.bf16.msra.mxu1 %v433_v6  ;;  %v346_v28 = vld [vmem:[%s596_s4] ss:$0 sm:$0xff]  ;;  %s323_s4 = sshll.u32 %s541_s2, 4  ;;  %s324_s4 = int_to_ptr.vmem [resolvable:$true] %s323_s4 }
  0x2d   :  { %377 = vmatprep.subr.bf16.mxu0 %v539_v0  ;;  %397 = vmatprep.subr.bf16.mxu1 %v539_v0  ;;  %s508_s11 = scalar_lea.vmem %s324_s4, 256  ;;  %p513_p2 = scmp.lt.s32.totalorder %s324_s4, %s324_s4 }
  0x2e   :  { %p509_p1 = scmp.ne.s32.totalorder %s324_s4, %s508_s11  ;;  %p514_p3 = scmp.lt.s32.totalorder %s508_s11, %s508_s11 }
  0x30   :  { %378 = vmatpush3.bf16.msra.mxu0 %v425_v3  ;;  %398 = vmatpush3.bf16.msra.mxu1 %v434_v8  ;;  %p515_p4 = por %p514_p3, %p513_p2 }
  0x31   :  { %379 = vmatprep.subr.bf16.mxu0 %v539_v0  ;;  %399 = vmatprep.subr.bf16.mxu1 %v539_v0 }
  0x32   :  { %p516_p5 = pnand %p515_p4, %p509_p1 }
  0x34   :  { %380 = vmatpush3.bf16.msra.mxu0 %v426_v5  ;;  %400 = vmatpush3.bf16.msra.mxu1 %v435_v10 }
  0x35   :  { %381 = vmatprep.subr.bf16.mxu0 %v539_v0  ;;  %401 = vmatprep.subr.bf16.mxu1 %v539_v0 }
  0x38   :  { %382 = vmatpush3.bf16.msra.mxu0 %v427_v7  ;;  %402 = vmatpush3.bf16.msra.mxu1 %v436_v12 }
  0x39   :  { %383 = vmatprep.subr.bf16.mxu0 %v539_v0  ;;  %403 = vmatprep.subr.bf16.mxu1 %v539_v0 }
  0x3c   :  { %384 = vmatpush3.bf16.msra.mxu0 %v428_v9  ;;  %404 = vmatpush3.bf16.msra.mxu1 %v437_v15 }
  0x3d   :  { %385 = vmatprep.subr.bf16.mxu0 %v539_v0  ;;  %405 = vmatprep.subr.bf16.mxu1 %v539_v0 }
  0x40   :  { %386 = vmatpush3.bf16.msra.mxu0 %v429_v11  ;;  %406 = vmatpush3.bf16.msra.mxu1 %v438_v16 }
  0x41   :  { %387 = vmatprep.subr.bf16.mxu0 %v539_v0  ;;  %407 = vmatprep.subr.bf16.mxu1 %v539_v0 }
  0x44   :  { %388 = vmatpush3.bf16.msra.mxu0 %v430_v13  ;;  %408 = vmatpush3.bf16.msra.mxu1 %v439_v17 }
  0x47   :  { %390 = vmatmul.mubr.bf16.vlgmr.msra.gmra.mxu0 %v431_v14 }
 0x107   :  { %v176_v19 = vpop.f32.mrf.mxu0 }
 0x108   :  { %v177_v21 = vadd.f32 %v336_v18, %v176_v19 }
 0x109   :  { %v391_v20 = vpop.f32.mrf.mxu0 }
 0x10a   :  { %v183_v25 = vmax.f32 %v177_v21, 0.0 }
 0x10b   :  { %v179_v22 = vpop.f32.mrf.mxu0 }
 0x10c   :  { %v180_v23 = vadd.f32 %v336_v18, %v179_v22 }
 0x10d   :  { %v392_v24 = vpop.f32.mrf.mxu0 }
 0x10e   :  { %v184_v26 = vmax.f32 %v180_v23, 0.0 }
 0x110   :  { %v185_v27 = vpack.c.bf16 %v184_v26, %v183_v25 }
 0x112   :  { %410 = vmatmul.mubr.bf16.vlgmr.msra.gmra.mxu1 %v185_v27 }
 0x1d2   :  { %v291_v29 = vpop.f32.mrf.mxu1 }
 0x1d3   :  { %v292_v30 = vadd.f32 %v346_v28, %v291_v29 }
 0x1d4   :  { %v411_v31 = vpop.f32.mrf.mxu1 }
 0x1d5   :  { %298 = vmax.xlane.f32.xlu0 %v292_v30 }
 0x1d6   :  { %v294_v32 = vpop.f32.mrf.mxu1 }
 0x1d7   :  { %v295_v33 = vadd.f32 %v346_v28, %v294_v32 }
 0x1d8   :  { %v412_v34 = vpop.f32.mrf.mxu1 }
 0x1d9   :  { %300 = vmax.xlane.f32.xlu0 %v295_v33 }
 0x25e   :  { %v299_v35 = vpop.xlane.xlu0 %298 }
 0x25f   :  { %v302_v36 = vsub.f32 %v292_v30, %v299_v35 }
 0x261   :  { %v304_v37 = vmul.f32 1.442695, %v302_v36 }
 0x262   :  { %v301_v38 = vpop.xlane.xlu0 %300 }
 0x263   :  { %440 = vpow2.f32 %v304_v37  ;;  %v303_v39 = vsub.f32 %v295_v33, %v301_v38 }
 0x265   :  { %v306_v40 = vmul.f32 1.442695, %v303_v39 }
 0x267   :  { %442 = vpow2.f32 %v306_v40 }
 0x270   :  { %v441_v41 = vpop.eup %440 }
 0x271   :  { %308 = vadd.xlane.f32.xlu1 %v441_v41 }
 0x274   :  { %v443_v42 = vpop.eup %442 }
 0x275   :  { %310 = vadd.xlane.f32.xlu1 %v443_v42 }
 0x2fa   :  { %v309_v43 = vpop.xlane.xlu1 %308 }
 0x2fb   :  { %444 = vrcp.f32 %v309_v43 }
 0x2fe   :  { %v311_v44 = vpop.xlane.xlu1 %310 }
 0x2ff   :  { %446 = vrcp.f32 %v311_v44 }
 0x308   :  { %v445_v45 = vpop.eup %444 }
 0x309   :  { %v313_v46 = vmul.f32 %v445_v45, %v441_v41 }
 0x30b   :  { %316 = vst [vmem:[#allocation8] sm:$0xff] %v313_v46 }
 0x30c   :  { %v447_v47 = vpop.eup %446 }
 0x30d   :  { %v315_v48 = vmul.f32 %v447_v47, %v443_v42 }
 0x30f   :  { %317 = vst [vmem:[#allocation8 + $0x8] sm:$0xff] %v315_v48 }
 0x310   :  { %519 = shalt.err (!%p516_p5)
}
 0x311   :  { %s542_s12 = smov 128   ;;  %s543_s13 = smov 8  }
 0x312   :  { %329 = dma.vmem_to_hbm [thread:$0]  %s324_s4, 256, %s597_s5, [#allocation4], %s542_s12, %s542_s12, %s543_s13  }
 0x313   :  { %532 = dma.done.wait [#allocation4], 256  }
 0x314   :  { %533 = vsyncadd [#allocation4], 4294967040 }
 0x315   :  { %333 = vsyncpa [#allocation3], 1 }
 0x316   :  { %334 = vsyncpa [#allocation6], 1 }
 0x317   :  { %335 = vsyncpa [#allocation4], 1 }

</bundles_post_ra>
